<compile_context>
chip_gen: v5e
topology: v5e:2x2
jax: 0.10.0
libtpu: 0.0.40
codegen_flags: <defaults>
</compile_context>

<pallas_src>
import functools

import jax
import jax.numpy as jnp
from jax.experimental import pallas as pl
from jax.experimental.pallas import tpu as pltpu

LANES = 128          # TPU lane width; batch is packed along this axis.
DEFAULT_BLOCK_ROWS = 2048   # rows per grid step -> 2048*128*4 B = 1 MiB/block


# ----------------------------------------------------------------------------
# Pallas kernel: fused 1 -> H -> 1 MLP, pure VPU/EUP work.
#   x_ref : VMEM (tr, 128) f32 block, batch on lanes
#   p_ref : SMEM (3H+1,) f32 packed params [w1 | b1 | w2 | b2]
# ----------------------------------------------------------------------------
def mlp_kernel(x_ref, p_ref, o_ref, *, hidden):
    x = x_ref[...]                                        # (tr, 128)
    acc = None
    # Static unroll over the (tiny, compile-time known) hidden width.
    for j in range(hidden):
        h = jax.nn.sigmoid(x * p_ref[j] + p_ref[hidden + j])   # EUP logistic
        term = h * p_ref[2 * hidden + j]                        # VPU mul
        acc = term if acc is None else acc + term
    o_ref[...] = acc + p_ref[3 * hidden]                  # + b2, lane-dense store


# ----------------------------------------------------------------------------
# One-time parameter packing (hoisted out of the per-call path): a single
# SMEM-resident flat array -> kernel takes 2 operands instead of 5.
# ----------------------------------------------------------------------------
def pack_params(params):
    """params = [((1,H) w1, (H,) b1), ((H,1) w2, (1,) b2)] -> ((3H+1,) f32, H)."""
    (w1, b1), (w2, b2) = params
    hidden = int(jnp.shape(w1)[1])
    flat = jnp.concatenate([
        jnp.asarray(w1, jnp.float32).reshape(-1),   # [0, H)
        jnp.asarray(b1, jnp.float32).reshape(-1),   # [H, 2H)
        jnp.asarray(w2, jnp.float32).reshape(-1),   # [2H, 3H)
        jnp.asarray(b2, jnp.float32).reshape(-1),   # [3H]
    ])
    return flat, hidden


def net_forward(x, packed_params, *, block_rows=DEFAULT_BLOCK_ROWS):
    """Forward pass equivalent to Net([1, 4, 1]).forward(x).

    x: (N, 1) float32.  Returns (N,) float32 for N > 1 (scalar for N == 1,
    matching torch.squeeze).
    """
    p_flat, hidden = packed_params
    n = x.shape[0]

    # Pack the batch onto the lane axis.  (N,1) -> (N,) is free; the reshape to
    # (rows, 128) is zero-copy when N is lane-aligned.  Only a ragged tail
    # (< 128 elements) forces a pad; padded lanes compute finite garbage that
    # is sliced off below.
    x_flat = jnp.asarray(x, jnp.float32).reshape(-1)
    rem = n % LANES
    if rem != 0:
        x_flat = jnp.pad(x_flat, (0, LANES - rem))
    rows = x_flat.shape[0] // LANES
    x_p = x_flat.reshape(rows, LANES)

    # Row tiling: single block when it already fits comfortably, otherwise a
    # 1-D pipelined grid with (8,128)-aligned blocks; the cdiv grid's partial
    # last block absorbs any row-count raggedness.
    if rows <= block_rows:
        tr = rows                       # block == full extent (no 8-div needed)
    else:
        tr = max(8, (block_rows // 8) * 8)
    grid = (pl.cdiv(rows, tr),)

    block_spec = pl.BlockSpec((tr, LANES), lambda i: (i, 0))
    smem_spec = pl.BlockSpec(memory_space=pltpu.MemorySpace.SMEM)

    out_p = pl.pallas_call(
        functools.partial(mlp_kernel, hidden=hidden),
        out_shape=jax.ShapeDtypeStruct((rows, LANES), jnp.float32),
        grid=grid,
        in_specs=[block_spec, smem_spec],
        out_specs=block_spec,
        compiler_params=pltpu.CompilerParams(
            dimension_semantics=("parallel",)),   # shards rows across v7x's 2 TCs
    )(x_p, p_flat)

    out_flat = out_p.reshape(-1)[:n]        # (N,)
    return jnp.squeeze(out_flat)            # torch.squeeze semantics


def init_params(key, architecture=(1, 4, 1)):
    """Deterministic init mimicking nn.Linear default (U[-1/sqrt(fan_in), ...]).

    Weights stored as (fan_in, fan_out) so forward is x @ W (== PyTorch x @ W.T).
    """
    params = []
    for i in range(len(architecture) - 1):
        fan_in, fan_out = architecture[i], architecture[i + 1]
        key, kw, kb = jax.random.split(key, 3)
        bound = 1.0 / (fan_in ** 0.5)
        w = jax.random.uniform(kw, (fan_in, fan_out), jnp.float32, -bound, bound)
        b = jax.random.uniform(kb, (fan_out,), jnp.float32, -bound, bound)
        params.append((w, b))
    return params


def net_forward_ref(x, params):
    """Plain-JAX reference for correctness checking."""
    (w1, b1), (w2, b2) = params
    h = jax.nn.sigmoid(x @ w1 + b1)
    out = h @ w2 + b2
    return jnp.squeeze(out)


if __name__ == "__main__":
    key = jax.random.PRNGKey(0)
    key, kx1, kx2, kx3 = jax.random.split(key, 4)

    architecture = (1, 4, 1)
    params = init_params(key, architecture)
    packed = pack_params(params)          # hoisted out of the per-call path

    # 1) Small batch (ragged: pads tail to one lane row, single block).
    x_small = jax.random.normal(kx1, (8, 1), dtype=jnp.float32)
    out_small = jax.block_until_ready(net_forward(x_small, packed))
    ref_small = net_forward_ref(x_small, params)
    assert out_small.shape == ref_small.shape == (8,)
    assert jnp.allclose(out_small, ref_small, atol=1e-5, rtol=1e-5)

    # 2) Lane-aligned batch (zero-copy reshape path, no pad).
    x_aligned = jax.random.normal(kx2, (256, 1), dtype=jnp.float32)
    out_aligned = jax.block_until_ready(net_forward(x_aligned, packed))
    ref_aligned = net_forward_ref(x_aligned, params)
    assert jnp.allclose(out_aligned, ref_aligned, atol=1e-5, rtol=1e-5)

    # 3) Multi-block grid with a partial last block (small block_rows to keep
    #    the test tiny while exercising the pipelined-grid path).
    x_grid = jax.random.normal(kx3, (2600, 1), dtype=jnp.float32)
    out_grid = jax.block_until_ready(net_forward(x_grid, packed, block_rows=8))
    ref_grid = net_forward_ref(x_grid, params)
    assert out_grid.shape == ref_grid.shape == (2600,)
    assert jnp.allclose(out_grid, ref_grid, atol=1e-5, rtol=1e-5)

    print("KERNEL_OK")
</pallas_src>

<mosaic_0001>
module attributes {stable_mosaic.version = 11 : i64} {
  func.func @mlp_kernel(%arg0: i32, %arg1: memref<1x128xf32, #tpu.memory_space<vmem>>, %arg2: memref<13xf32, #tpu.memory_space<smem>>, %arg3: memref<1x128xf32, #tpu.memory_space<vmem>>) attributes {dimension_semantics = [#tpu.dimension_semantics<parallel>], iteration_bounds = array<i64: 1>, scalar_prefetch = 0 : i64, scratch_operands = 0 : i64, tpu.core_type = #tpu.core_type<tc>, window_params = [{transform_indices = @transform_0, window_bounds = array<i64: 1, 128>}, {transform_indices = @transform_1, window_bounds = array<i64: 13>}, {transform_indices = @transform_2, window_bounds = array<i64: 1, 128>}]} {
    %c0 = arith.constant 0 : index
    %c0_0 = arith.constant 0 : index
    %0 = vector.load %arg1[%c0, %c0_0] : memref<1x128xf32, #tpu.memory_space<vmem>>, vector<1x128xf32>
    %c0_1 = arith.constant 0 : index
    %1 = memref.load %arg2[%c0_1] : memref<13xf32, #tpu.memory_space<smem>>
    %2 = vector.broadcast %1 : f32 to vector<1x128xf32>
    %3 = arith.mulf %0, %2 : vector<1x128xf32>
    %c4 = arith.constant 4 : index
    %4 = memref.load %arg2[%c4] : memref<13xf32, #tpu.memory_space<smem>>
    %5 = vector.broadcast %4 : f32 to vector<1x128xf32>
    %6 = arith.addf %3, %5 : vector<1x128xf32>
    %7 = arith.negf %6 : vector<1x128xf32>
    %8 = math.exp %7 : vector<1x128xf32>
    %cst = arith.constant 1.000000e+00 : f32
    %9 = vector.broadcast %cst : f32 to vector<1x128xf32>
    %10 = arith.addf %9, %8 : vector<1x128xf32>
    %11 = arith.divf %9, %10 : vector<1x128xf32>
    %c8 = arith.constant 8 : index
    %12 = memref.load %arg2[%c8] : memref<13xf32, #tpu.memory_space<smem>>
    %13 = vector.broadcast %12 : f32 to vector<1x128xf32>
    %14 = arith.mulf %11, %13 : vector<1x128xf32>
    %c1 = arith.constant 1 : index
    %15 = memref.load %arg2[%c1] : memref<13xf32, #tpu.memory_space<smem>>
    %16 = vector.broadcast %15 : f32 to vector<1x128xf32>
    %17 = arith.mulf %0, %16 : vector<1x128xf32>
    %c5 = arith.constant 5 : index
    %18 = memref.load %arg2[%c5] : memref<13xf32, #tpu.memory_space<smem>>
    %19 = vector.broadcast %18 : f32 to vector<1x128xf32>
    %20 = arith.addf %17, %19 : vector<1x128xf32>
    %21 = arith.negf %20 : vector<1x128xf32>
    %22 = math.exp %21 : vector<1x128xf32>
    %cst_2 = arith.constant 1.000000e+00 : f32
    %23 = vector.broadcast %cst_2 : f32 to vector<1x128xf32>
    %24 = arith.addf %23, %22 : vector<1x128xf32>
    %25 = arith.divf %23, %24 : vector<1x128xf32>
    %c9 = arith.constant 9 : index
    %26 = memref.load %arg2[%c9] : memref<13xf32, #tpu.memory_space<smem>>
    %27 = vector.broadcast %26 : f32 to vector<1x128xf32>
    %28 = arith.mulf %25, %27 : vector<1x128xf32>
    %29 = arith.addf %14, %28 : vector<1x128xf32>
    %c2 = arith.constant 2 : index
    %30 = memref.load %arg2[%c2] : memref<13xf32, #tpu.memory_space<smem>>
    %31 = vector.broadcast %30 : f32 to vector<1x128xf32>
    %32 = arith.mulf %0, %31 : vector<1x128xf32>
    %c6 = arith.constant 6 : index
    %33 = memref.load %arg2[%c6] : memref<13xf32, #tpu.memory_space<smem>>
    %34 = vector.broadcast %33 : f32 to vector<1x128xf32>
    %35 = arith.addf %32, %34 : vector<1x128xf32>
    %36 = arith.negf %35 : vector<1x128xf32>
    %37 = math.exp %36 : vector<1x128xf32>
    %cst_3 = arith.constant 1.000000e+00 : f32
    %38 = vector.broadcast %cst_3 : f32 to vector<1x128xf32>
    %39 = arith.addf %38, %37 : vector<1x128xf32>
    %40 = arith.divf %38, %39 : vector<1x128xf32>
    %c10 = arith.constant 10 : index
    %41 = memref.load %arg2[%c10] : memref<13xf32, #tpu.memory_space<smem>>
    %42 = vector.broadcast %41 : f32 to vector<1x128xf32>
    %43 = arith.mulf %40, %42 : vector<1x128xf32>
    %44 = arith.addf %29, %43 : vector<1x128xf32>
    %c3 = arith.constant 3 : index
    %45 = memref.load %arg2[%c3] : memref<13xf32, #tpu.memory_space<smem>>
    %46 = vector.broadcast %45 : f32 to vector<1x128xf32>
    %47 = arith.mulf %0, %46 : vector<1x128xf32>
    %c7 = arith.constant 7 : index
    %48 = memref.load %arg2[%c7] : memref<13xf32, #tpu.memory_space<smem>>
    %49 = vector.broadcast %48 : f32 to vector<1x128xf32>
    %50 = arith.addf %47, %49 : vector<1x128xf32>
    %51 = arith.negf %50 : vector<1x128xf32>
    %52 = math.exp %51 : vector<1x128xf32>
    %cst_4 = arith.constant 1.000000e+00 : f32
    %53 = vector.broadcast %cst_4 : f32 to vector<1x128xf32>
    %54 = arith.addf %53, %52 : vector<1x128xf32>
    %55 = arith.divf %53, %54 : vector<1x128xf32>
    %c11 = arith.constant 11 : index
    %56 = memref.load %arg2[%c11] : memref<13xf32, #tpu.memory_space<smem>>
    %57 = vector.broadcast %56 : f32 to vector<1x128xf32>
    %58 = arith.mulf %55, %57 : vector<1x128xf32>
    %59 = arith.addf %44, %58 : vector<1x128xf32>
    %c12 = arith.constant 12 : index
    %60 = memref.load %arg2[%c12] : memref<13xf32, #tpu.memory_space<smem>>
    %61 = vector.broadcast %60 : f32 to vector<1x128xf32>
    %62 = arith.addf %59, %61 : vector<1x128xf32>
    %c0_5 = arith.constant 0 : index
    %c0_6 = arith.constant 0 : index
    %63 = vector.load %arg3[%c0_5, %c0_6] : memref<1x128xf32, #tpu.memory_space<vmem>>, vector<1x128xf32>
    tpu.vector_store %arg3[%c0_5, %c0_6], %62 {strides = array<i32>} : memref<1x128xf32, #tpu.memory_space<vmem>>, vector<1x128xf32>,
    return
  }
  func.func @transform_0(%arg0: i32) -> (i32, i32) {
    %c0_i32 = arith.constant 0 : i32
    %c0_i32_0 = arith.constant 0 : i32
    return %arg0, %c0_i32 : i32, i32
  }
  func.func @transform_1(%arg0: i32) -> i32 {
    %c0_i32 = arith.constant 0 : i32
    %c0_i32_0 = arith.constant 0 : i32
    return %c0_i32 : i32
  }
  func.func @transform_2(%arg0: i32) -> (i32, i32) {
    %c0_i32 = arith.constant 0 : i32
    %c0_i32_0 = arith.constant 0 : i32
    return %arg0, %c0_i32 : i32, i32
  }
}

</mosaic_0001>

<bundles_post_ra>
// kernel: tpu_custom_call.1
= control target key start
LH: loop header
LB: loop body
LE: loop exit
PB: predicated region body
PF: predicated region fallthrough
CT: control target
= control target key end

     0   :  { %7 = vsyncpa [#allocation3], 0  ;;  %s334_s0 = inlined_call_operand.hbm [shape: f32[1,128], index: 0, kind: input, shape index: {}]   ;;  %s335_s1 = inlined_call_operand.hbm [shape: f32[13], index: 1, kind: input, shape index: {}]   ;;  %s336_s2 = inlined_call_operand.hbm [shape: f32[1,128], index: 2, kind: output, shape index: {}]  }
   0x1   :  { %8 = vsyncpa [#allocation5], 0 }
   0x2   :  { %9 = vsyncpa [#allocation4], 0  ;;  %s15_s11 = sshll.u32 %s334_s0, 4  ;;  %s278_s12 = smov [#allocation2]   ;;  %s16_s11 = int_to_ptr.hbm [resolvable:$true] %s15_s11 }
   0x3   :  { %s17_s13 = sshll.u32 %s278_s12, 4  ;;  %s26_s16 = sshll.u32 %s335_s1, 4  ;;  %s18_s13 = int_to_ptr.vmem [resolvable:$true] %s17_s13  ;;  %s27_s16 = int_to_ptr.hbm [resolvable:$true] %s26_s16 }
   0x4   :  { %20 = dma.hbm_to_vmem [thread:$0]  %s16_s11, 16, %s18_s13, [#allocation3]  }
   0x5   :  { %s279_s17 = smov [#allocation6]  }
   0x6   :  { %29 = dma.hbm_to_smem %s27_s16, 16, %s279_s17, [#allocation5]  }
   0x7   :  { %272 = dma.done.wait [#allocation3], 16  }
   0x8   :  { %273 = vsyncadd [#allocation3], 4294967280 }
   0x9   :  { %274 = dma.done.wait [#allocation5], 16  }
   0xa   :  { %275 = vsyncadd [#allocation5], 4294967280 }
   0xb   :  { %38 = sfence }
   0xc   :  { %s40_s18 = sld [smem:[#allocation6]]  ;;  %v39_v0 = vld [vmem:[#allocation2] sm:$0x1]  ;;  %s280_s29 = smov [#allocation7]  }
   0xd   :  { %s177_s19 = sld [smem:[#allocation6 + $0x4]]  ;;  %s164_s30 = sshll.u32 %s280_s29, 4  ;;  %s165_s30 = int_to_ptr.vmem [resolvable:$true] %s164_s30 }
   0xe   :  { %s180_s0 = sld [smem:[#allocation6 + $0x1]]  ;;  %s166_s5 = sshll.u32 %s336_s2, 4  ;;  %s167_s5 = int_to_ptr.hbm [resolvable:$true] %s166_s5 }
   0xf   :  { %s181_s20 = sld [smem:[#allocation6 + $0x5]] }
  0x10   :  { %s184_s21 = sld [smem:[#allocation6 + $0x2]] }
  0x11   :  { %s185_s22 = sld [smem:[#allocation6 + $0x6]] }
  0x12   :  { %v41_v1 = vstv %s40_s18  ;;  %s188_s1 = sld [smem:[#allocation6 + $0x3]] }
  0x13   :  { %v42_v2 = vmul.f32 %v41_v1, %v39_v0  ;;  %v44_v3 = vstv %s177_s19  ;;  %s189_s23 = sld [smem:[#allocation6 + $0x7]] }
  0x14   :  { %v69_v5 = vstv %s180_s0  ;;  %s302_s24 = sld [smem:[#allocation6 + $0x8]] }
  0x15   :  { %v45_v4 = vadd.f32 %v44_v3, %v42_v2  ;;  %v70_v6 = vmul.f32 %v69_v5, %v39_v0  ;;  %v72_v7 = vstv %s181_s20  ;;  %s304_s25 = sld [smem:[#allocation6 + $0x9]] }
  0x16   :  { %v98_v10 = vstv %s184_s21  ;;  %s306_s26 = sld [smem:[#allocation6 + $0xa]] }
  0x17   :  { %v178_v8 = vmul.f32 -1.442695, %v45_v4  ;;  %v73_v9 = vadd.f32 %v72_v7, %v70_v6  ;;  %v99_v11 = vmul.f32 %v98_v10, %v39_v0  ;;  %v101_v12 = vstv %s185_s22  ;;  %s191_s27 = sld [smem:[#allocation6 + $0xb]] }
  0x18   :  { %v127_v15 = vstv %s188_s1  ;;  %s192_s28 = sld [smem:[#allocation6 + $0xc]] }
  0x19   :  { %196 = vpow2.f32 %v178_v8  ;;  %v182_v13 = vmul.f32 -1.442695, %v73_v9  ;;  %v102_v14 = vadd.f32 %v101_v12, %v99_v11  ;;  %v128_v16 = vmul.f32 %v127_v15, %v39_v0 }
  0x1a   :  { %v130_v17 = vstv %s189_s23  ;;  %v66_v47 = vstv %s302_s24 }
  0x1b   :  { %198 = vpow2.f32 %v182_v13  ;;  %v186_v18 = vmul.f32 -1.442695, %v102_v14  ;;  %v131_v19 = vadd.f32 %v130_v17, %v128_v16  ;;  %v94_v50 = vstv %s304_s25 }
  0x1c   :  { %v123_v5 = vstv %s306_s26 }
  0x1d   :  { %200 = vpow2.f32 %v186_v18  ;;  %v190_v22 = vmul.f32 -1.442695, %v131_v19  ;;  %v152_v13 = vstv %s191_s27 }
  0x1e   :  { %v156_v18 = vstv %s192_s28 }
  0x1f   :  { %v197_v20 = vpop.eup %196 }
  0x20   :  { %v49_v21 = vadd.f32 1.0, %v197_v20 }
  0x21   :  { %v199_v23 = vpop.eup %198 }
  0x22   :  { %202 = vrcp.f32 %v49_v21  ;;  %v77_v24 = vadd.f32 1.0, %v199_v23  ;;  %v61_v30 = vand.u32 2147483648, %v49_v21  ;;  %vm55_vm0 = vweird.f32 %v49_v21 }
  0x23   :  { %204 = vpow2.f32 %v190_v22  ;;  %v201_v25 = vpop.eup %200  ;;  %v59_v34 = vand.u32 2147483647, %v49_v21 }
  0x24   :  { %206 = vrcp.f32 %v77_v24  ;;  %v106_v26 = vadd.f32 1.0, %v201_v25  ;;  %v89_v36 = vand.u32 2147483648, %v77_v24  ;;  %v62_v38 = vor.u32 1.1754944e-38, %v61_v30 }
  0x25   :  { %vm83_vm2 = vweird.f32 %v77_v24  ;;  %v87_v42 = vand.u32 2147483647, %v77_v24  ;;  %vm60_vm5 = vcmp.eq.f32.partialorder %v59_v34, 8.507059e+37 }
  0x26   :  { %208 = vrcp.f32 %v106_v26  ;;  %v116_v43 = vand.u32 2147483647, %v106_v26  ;;  %v118_v46 = vand.u32 2147483648, %v106_v26  ;;  %v90_v49 = vor.u32 1.1754944e-38, %v89_v36 }
  0x27   :  { %vm112_vm7 = vweird.f32 %v106_v26  ;;  %vm88_vm9 = vcmp.eq.f32.partialorder %v87_v42, 8.507059e+37 }
  0x28   :  { %v203_v27 = vpop.eup %202  ;;  %vm321_vm10 = vcmp.eq.f32.partialorder %v116_v43, 8.507059e+37  ;;  %v119_v59 = vor.u32 1.1754944e-38, %v118_v46 }
  0x29   :  { %v205_v28 = vpop.eup %204  ;;  %v51_v29 = vmul.f32 %v203_v27, %v49_v21  ;;  %vm56_vm1 = vweird.f32 %v203_v27 }
  0x2a   :  { %v135_v31 = vadd.f32 1.0, %v205_v28  ;;  %v207_v32 = vpop.eup %206  ;;  %vm308_vm3 = vmor %vm55_vm0, %vm56_vm1 }
  0x2b   :  { %v52_v33 = vsub.f32 1.0, %v51_v29  ;;  %v79_v35 = vmul.f32 %v207_v32, %v77_v24  ;;  %vm84_vm4 = vweird.f32 %v207_v32 }
  0x2c   :  { %210 = vrcp.f32 %v135_v31  ;;  %v209_v39 = vpop.eup %208  ;;  %vm317_vm6 = vmor %vm83_vm2, %vm84_vm4  ;;  %vm141_vm11 = vweird.f32 %v135_v31  ;;  %v145_v63 = vand.u32 2147483647, %v135_v31  ;;  %v147_v0 = vand.u32 2147483648, %v135_v31 }
  0x2d   :  { %v53_v37 = vmul.f32 %v203_v27, %v52_v33  ;;  %v80_v41 = vsub.f32 1.0, %v79_v35  ;;  %v108_v45 = vmul.f32 %v209_v39, %v106_v26  ;;  %vm113_vm8 = vweird.f32 %v209_v39 }
  0x2e   :  { %vm114_vm12 = vmor %vm112_vm7, %vm113_vm8  ;;  %v148_v10 = vor.u32 1.1754944e-38, %v147_v0  ;;  %vm146_vm15 = vcmp.eq.f32.partialorder %v145_v63, 8.507059e+37 }
  0x2f   :  { %v54_v44 = vadd.f32 %v203_v27, %v53_v37  ;;  %v81_v48 = vmul.f32 %v207_v32, %v80_v41  ;;  %v109_v53 = vsub.f32 1.0, %v108_v45 }
  0x31   :  { %v58_v51 = vsel %vm308_vm3, %v203_v27, %v54_v44  ;;  %v82_v56 = vadd.f32 %v207_v32, %v81_v48  ;;  %v110_v58 = vmul.f32 %v209_v39, %v109_v53 }
  0x32   :  { %v211_v54 = vpop.eup %210  ;;  %v63_v55 = vsel %vm60_vm5, %v62_v38, %v58_v51 }
  0x33   :  { %v137_v60 = vmul.f32 %v211_v54, %v135_v31  ;;  %v67_v61 = vmul.f32 %v66_v47, %v63_v55  ;;  %v86_v62 = vsel %vm317_vm6, %v207_v32, %v82_v56  ;;  %v111_v2 = vadd.f32 %v209_v39, %v110_v58 }
  0x34   :  { %v91_v1 = vsel %vm88_vm9, %v90_v49, %v86_v62  ;;  %vm142_vm13 = vweird.f32 %v211_v54 }
  0x35   :  { %v138_v3 = vsub.f32 1.0, %v137_v60  ;;  %v95_v4 = vmul.f32 %v94_v50, %v91_v1  ;;  %v115_v6 = vsel %vm114_vm12, %v209_v39, %v111_v2  ;;  %vm143_vm14 = vmor %vm141_vm11, %vm142_vm13 }
  0x36   :  { %v120_v9 = vsel %vm321_vm10, %v119_v59, %v115_v6 }
  0x37   :  { %v139_v7 = vmul.f32 %v211_v54, %v138_v3  ;;  %v96_v8 = vadd.f32 %v95_v4, %v67_v61  ;;  %v124_v11 = vmul.f32 %v123_v5, %v120_v9 }
  0x39   :  { %v140_v12 = vadd.f32 %v211_v54, %v139_v7  ;;  %v125_v14 = vadd.f32 %v124_v11, %v96_v8 }
  0x3b   :  { %v144_v15 = vsel %vm143_vm14, %v211_v54, %v140_v12 }
  0x3c   :  { %v149_v16 = vsel %vm146_vm15, %v148_v10, %v144_v15 }
  0x3d   :  { %v153_v17 = vmul.f32 %v152_v13, %v149_v16 }
  0x3f   :  { %v154_v19 = vadd.f32 %v153_v17, %v125_v14 }
  0x41   :  { %v157_v20 = vadd.f32 %v156_v18, %v154_v19 }
  0x43   :  { %158 = vst [vmem:[#allocation7] sm:$0x1] %v157_v20 }
  0x44   :  { %169 = dma.vmem_to_hbm [thread:$0]  %s165_s30, 16, %s167_s5, [#allocation4]  }
  0x45   :  { %276 = dma.done.wait [#allocation4], 16  }
  0x46   :  { %277 = vsyncadd [#allocation4], 4294967280 }
  0x47   :  { %174 = vsyncpa [#allocation3], 1 }
  0x48   :  { %175 = vsyncpa [#allocation4], 1 }
  0x49   :  { %176 = vsyncpa [#allocation5], 1 }

</bundles_post_ra>
